<compile_context>
chip_gen: v7x
topology: tpu7x:2x2x1
jax: 0.10.0
libtpu: 0.0.40
codegen_flags: <defaults>
</compile_context>

<pallas_src>
import functools

import jax
import jax.numpy as jnp
from jax.experimental import pallas as pl
from jax.experimental.pallas import tpu as pltpu

LN_EPS = 1e-5  # torch.nn.LayerNorm default eps

_MAX_BT = 4096  # VMEM-safe tile (incl. 128-lane padding, double buffers, temps)


def _layernorm(x, gamma, beta):
    # var = E[x^2] - mu^2: both reduces are independent (issue back-to-back on
    # the XLU) and one full-tile VPU pass (x - mu before squaring) is removed.
    mu = jnp.mean(x, axis=-1, keepdims=True)
    ex2 = jnp.mean(x * x, axis=-1, keepdims=True)
    var = jnp.maximum(ex2 - mu * mu, 0.0)
    return (x - mu) * jax.lax.rsqrt(var + LN_EPS) * gamma + beta


def critic_kernel(state_ref, action_ref,
                  fc1_w_ref, fc2_w_ref, av_w_ref,
                  vecs1_ref, vecs2_ref,
                  q_out_ref):
    # vecs1 rows: [fc1_b ; ln1_w ; ln1_b]                 (3, h1)
    # vecs2 rows: [fc2_b ; av_b ; ln2_w ; ln2_b ; q_w^T]  (5, h2)
    state = state_ref[...]
    action = action_ref[...]

    # fc1 -> LayerNorm -> ReLU
    h = jnp.dot(state, fc1_w_ref[...], preferred_element_type=jnp.float32)
    h = h + vecs1_ref[0:1, :]
    h = _layernorm(h, vecs1_ref[1:2, :], vecs1_ref[2:3, :])
    h = jnp.maximum(h, 0.0)

    # Two lane-aligned matmuls (no concat, no mid-vreg lane slices).
    z1 = jnp.dot(h, fc2_w_ref[...],
                 preferred_element_type=jnp.float32) + vecs2_ref[0:1, :]
    z2 = jnp.dot(action, av_w_ref[...],
                 preferred_element_type=jnp.float32) + vecs2_ref[1:2, :]

    s2 = _layernorm(z1, vecs2_ref[2:3, :], vecs2_ref[3:4, :])
    sa = jnp.maximum(s2 + z2, 0.0)

    # q head: VPU multiply + XLU lane reduce. keepdims keeps the natural
    # (bt, 1) layout -> plain store, no sublane->lane relayout. (q_b is added
    # in the wrapper.)
    q_out_ref[...] = jnp.sum(sa * vecs2_ref[4:5, :], axis=-1, keepdims=True)


def _num_tensorcores():
    """Best-effort TensorCore count per device (2 on megacore/v7x chips)."""
    try:
        kind = jax.devices()[0].device_kind.lower()
    except Exception:
        return 1
    if any(tag in kind for tag in ("v7", "7x", "v4", "v5p")):
        return 2
    return 1


def _plan_tiling(B, num_tc):
    """Return (batch_tile, num_steps); batch_tile * num_steps >= B (padded)."""
    cdiv = lambda a, b: -(-a // b)
    if num_tc <= 1 or B < 256:
        # Single-TC chips (v5e/v6e) or tiny batches: one big step if it fits.
        if B <= _MAX_BT:
            return B, 1
        steps = cdiv(B, _MAX_BT)
        bt = cdiv(cdiv(B, steps), 8) * 8          # sublane-aligned
        return bt, steps
    # Two TensorCores (v7x): even step count for balanced megacore sharding.
    steps = max(2, cdiv(B, _MAX_BT))
    if steps % 2:
        steps += 1
    bt = cdiv(cdiv(B, steps), 8) * 8
    return bt, steps


@functools.partial(jax.jit, static_argnames=("batch_tile", "num_steps"))
def _critic_forward(state, action, params, batch_tile, num_steps):
    B, d_in = state.shape
    _, n_act = action.shape
    h1 = params["fc1_w"].shape[1]
    h2 = params["fc2_w"].shape[1]

    bt = batch_tile
    B_pad = bt * num_steps
    if B_pad != B:
        pad = B_pad - B
        state = jnp.pad(state, ((0, pad), (0, 0)))
        action = jnp.pad(action, ((0, pad), (0, 0)))

    # ---- parameter packing (tiny one-off XLA ops outside the kernel) ----
    vecs1 = jnp.concatenate(
        [params["fc1_b"], params["ln1_w"], params["ln1_b"]], axis=0)       # (3, h1)
    vecs2 = jnp.concatenate(
        [params["fc2_b"], params["av_b"], params["ln2_w"], params["ln2_b"],
         params["q_w"].reshape(1, h2)], axis=0)                            # (5, h2)

    grid = (num_steps,)

    def row_spec(ncols):
        return pl.BlockSpec((bt, ncols), lambda i: (i, 0))

    def full_spec(shape):
        return pl.BlockSpec(shape, lambda i: (0,) * len(shape))

    in_specs = [
        row_spec(d_in),              # state
        row_spec(n_act),             # action
        full_spec((d_in, h1)),       # fc1_w   (constant index -> fetched once)
        full_spec((h1, h2)),         # fc2_w
        full_spec((n_act, h2)),      # av_w
        full_spec((3, h1)),          # vecs1: fc1_b / ln1_w / ln1_b
        full_spec((5, h2)),          # vecs2: fc2_b / av_b / ln2_w / ln2_b / q_w
    ]
    out_spec = pl.BlockSpec((bt, 1), lambda i: (i, 0))

    q_pad = pl.pallas_call(
        critic_kernel,
        out_shape=jax.ShapeDtypeStruct((B_pad, 1), jnp.float32),
        grid_spec=pltpu.PrefetchScalarGridSpec(
            num_scalar_prefetch=0,
            grid=grid,
            in_specs=in_specs,
            out_specs=out_spec,
        ),
        compiler_params=pltpu.CompilerParams(
            dimension_semantics=("parallel",),
            vmem_limit_bytes=32 * 1024 * 1024),
    )(state, action, params["fc1_w"], params["fc2_w"], params["av_w"],
      vecs1, vecs2)

    # q bias is a single scalar: add it in the wrapper (free) instead of
    # shipping a padded (8,128) VMEM block into the kernel.
    return q_pad[:B] + params["q_b"]


def critic_forward(state, action, params):
    B = state.shape[0]
    bt, steps = _plan_tiling(B, _num_tensorcores())
    return _critic_forward(state, action, params, bt, steps)


def init_params(key, input_dims, hidden_dims, n_actions):
    """Deterministic init mirroring CriticNetwork._initialize_weights bounds.

    PyTorch Linear weight is (out, in); we store it transposed as (in, out).
    The reference uses weight.size(0) == out_features for the bound.
    """
    h1, h2 = hidden_dims
    f1 = 1.0 / jnp.sqrt(jnp.float32(h1))          # fc1.weight.size(0) = fc1_dims
    f2 = 1.0 / jnp.sqrt(jnp.float32(h2))          # fc2.weight.size(0) = fc2_dims
    f3 = jnp.float32(0.003)
    f4 = 1.0 / jnp.sqrt(jnp.float32(h2))          # action_value.weight.size(0)

    ks = jax.random.split(key, 8)
    u = lambda k, shape, b: jax.random.uniform(
        k, shape, dtype=jnp.float32, minval=-b, maxval=b)

    return {
        "fc1_w": u(ks[0], (input_dims, h1), f1),
        "fc1_b": u(ks[1], (1, h1), f1),
        "fc2_w": u(ks[2], (h1, h2), f2),
        "fc2_b": u(ks[3], (1, h2), f2),
        "av_w": u(ks[4], (n_actions, h2), f4),
        "av_b": u(ks[5], (1, h2), f4),
        "q_w": u(ks[6], (h2, 1), f3),
        "q_b": u(ks[7], (1, 1), f3),
        # LayerNorm defaults: weight=1, bias=0
        "ln1_w": jnp.ones((1, h1), jnp.float32),
        "ln1_b": jnp.zeros((1, h1), jnp.float32),
        "ln2_w": jnp.ones((1, h2), jnp.float32),
        "ln2_b": jnp.zeros((1, h2), jnp.float32),
    }


def reference_forward(state, action, p):
    def ln(x, g, b):
        mu = jnp.mean(x, axis=-1, keepdims=True)
        var = jnp.mean((x - mu) ** 2, axis=-1, keepdims=True)
        return (x - mu) / jnp.sqrt(var + LN_EPS) * g + b

    s1 = jnp.maximum(ln(state @ p["fc1_w"] + p["fc1_b"], p["ln1_w"], p["ln1_b"]), 0.0)
    s2 = ln(s1 @ p["fc2_w"] + p["fc2_b"], p["ln2_w"], p["ln2_b"])
    a1 = action @ p["av_w"] + p["av_b"]
    sa = jnp.maximum(s2 + a1, 0.0)
    return sa @ p["q_w"] + p["q_b"]


if __name__ == "__main__":
    # Small shapes consistent with the module: input_dims=16,
    # hidden_dims=[32, 32], n_actions=4.
    D_IN, H1, H2, N_ACT = 16, 32, 32, 4

    key = jax.random.PRNGKey(0)
    k_state, k_action, k_params, k_state2, k_action2 = jax.random.split(key, 5)
    params = init_params(k_params, D_IN, (H1, H2), N_ACT)

    # Test 1: tiny batch (single grid step everywhere).
    B = 8
    state = jax.random.normal(k_state, (B, D_IN), dtype=jnp.float32)
    action = jax.random.normal(k_action, (B, N_ACT), dtype=jnp.float32)
    q = jax.block_until_ready(critic_forward(state, action, params))
    q_ref = reference_forward(state, action, params)
    assert q.shape == (B, 1), q.shape
    assert jnp.allclose(q, q_ref, atol=1e-5, rtol=1e-4), (q, q_ref)

    # Test 2: batch not divisible by the tile (exercises padding / the
    # even-step path on 2-TC chips, single-step path on 1-TC chips).
    B2 = 300
    state2 = jax.random.normal(k_state2, (B2, D_IN), dtype=jnp.float32)
    action2 = jax.random.normal(k_action2, (B2, N_ACT), dtype=jnp.float32)
    q2 = jax.block_until_ready(critic_forward(state2, action2, params))
    q2_ref = reference_forward(state2, action2, params)
    assert q2.shape == (B2, 1), q2.shape
    assert jnp.allclose(q2, q2_ref, atol=1e-5, rtol=1e-4), (q2, q2_ref)

    print("KERNEL_OK")
</pallas_src>

<mosaic_0001>
module attributes {stable_mosaic.version = 11 : i64} {
  func.func @critic_kernel(%arg0: i32, %arg1: memref<8x16xf32, #tpu.memory_space<vmem>>, %arg2: memref<8x4xf32, #tpu.memory_space<vmem>>, %arg3: memref<16x32xf32, #tpu.memory_space<vmem>>, %arg4: memref<32x32xf32, #tpu.memory_space<vmem>>, %arg5: memref<4x32xf32, #tpu.memory_space<vmem>>, %arg6: memref<3x32xf32, #tpu.memory_space<vmem>>, %arg7: memref<5x32xf32, #tpu.memory_space<vmem>>, %arg8: memref<8x1xf32, #tpu.memory_space<vmem>>) attributes {dimension_semantics = [#tpu.dimension_semantics<parallel>], iteration_bounds = array<i64: 1>, scalar_prefetch = 0 : i64, scratch_operands = 0 : i64, tpu.core_type = #tpu.core_type<tc>, window_params = [{transform_indices = @transform_0, window_bounds = array<i64: 8, 16>}, {transform_indices = @transform_1, window_bounds = array<i64: 8, 4>}, {pipeline_mode = #tpu.pipeline_mode<synchronous>, transform_indices = @transform_2, window_bounds = array<i64: 16, 32>}, {pipeline_mode = #tpu.pipeline_mode<synchronous>, transform_indices = @transform_3, window_bounds = array<i64: 32, 32>}, {pipeline_mode = #tpu.pipeline_mode<synchronous>, transform_indices = @transform_4, window_bounds = array<i64: 4, 32>}, {pipeline_mode = #tpu.pipeline_mode<synchronous>, transform_indices = @transform_5, window_bounds = array<i64: 3, 32>}, {pipeline_mode = #tpu.pipeline_mode<synchronous>, transform_indices = @transform_6, window_bounds = array<i64: 5, 32>}, {transform_indices = @transform_7, window_bounds = array<i64: 8, 1>}]} {
    %c0 = arith.constant 0 : index
    %c0_0 = arith.constant 0 : index
    %0 = vector.load %arg1[%c0, %c0_0] : memref<8x16xf32, #tpu.memory_space<vmem>>, vector<8x16xf32>
    %c0_1 = arith.constant 0 : index
    %c0_2 = arith.constant 0 : index
    %1 = vector.load %arg2[%c0_1, %c0_2] : memref<8x4xf32, #tpu.memory_space<vmem>>, vector<8x4xf32>
    %c0_3 = arith.constant 0 : index
    %c0_4 = arith.constant 0 : index
    %2 = vector.load %arg3[%c0_3, %c0_4] : memref<16x32xf32, #tpu.memory_space<vmem>>, vector<16x32xf32>
    %cst = arith.constant dense<0.000000e+00> : vector<8x32xf32>
    %3 = tpu.matmul %0, %2, %cst {dimension_numbers = #tpu.dot_dimension_numbers<[1], [0], [0], [1], [0, 0, 1, 1], [], []>} : vector<8x16xf32>, vector<16x32xf32>, vector<8x32xf32> -> vector<8x32xf32>
    %c0_5 = arith.constant 0 : index
    %c0_6 = arith.constant 0 : index
    %4 = vector.load %arg6[%c0_5, %c0_6] : memref<3x32xf32, #tpu.memory_space<vmem>>, vector<1x32xf32>
    %5 = vector.broadcast %4 : vector<1x32xf32> to vector<8x32xf32>
    %6 = arith.addf %3, %5 : vector<8x32xf32>
    %c1 = arith.constant 1 : index
    %c0_7 = arith.constant 0 : index
    %7 = vector.load %arg6[%c1, %c0_7] : memref<3x32xf32, #tpu.memory_space<vmem>>, vector<1x32xf32>
    %c2 = arith.constant 2 : index
    %c0_8 = arith.constant 0 : index
    %8 = vector.load %arg6[%c2, %c0_8] : memref<3x32xf32, #tpu.memory_space<vmem>>, vector<1x32xf32>
    %cst_9 = arith.constant dense<0.000000e+00> : vector<8xf32>
    %9 = vector.multi_reduction <add>, %6, %cst_9 [1] : vector<8x32xf32> to vector<8xf32>
    %10 = vector.shape_cast %9 : vector<8xf32> to vector<8x1xf32>
    %cst_10 = arith.constant 3.200000e+01 : f32
    %11 = vector.broadcast %cst_10 : f32 to vector<8x1xf32>
    %12 = arith.divf %10, %11 : vector<8x1xf32>
    %13 = arith.mulf %6, %6 : vector<8x32xf32>
    %cst_11 = arith.constant dense<0.000000e+00> : vector<8xf32>
    %14 = vector.multi_reduction <add>, %13, %cst_11 [1] : vector<8x32xf32> to vector<8xf32>
    %15 = vector.shape_cast %14 : vector<8xf32> to vector<8x1xf32>
    %cst_12 = arith.constant 3.200000e+01 : f32
    %16 = vector.broadcast %cst_12 : f32 to vector<8x1xf32>
    %17 = arith.divf %15, %16 : vector<8x1xf32>
    %18 = arith.mulf %12, %12 : vector<8x1xf32>
    %19 = arith.subf %17, %18 : vector<8x1xf32>
    %cst_13 = arith.constant 0.000000e+00 : f32
    %20 = vector.broadcast %cst_13 : f32 to vector<8x1xf32>
    %21 = arith.maximumf %19, %20 : vector<8x1xf32>
    %22 = vector.broadcast %12 : vector<8x1xf32> to vector<8x32xf32>
    %23 = arith.subf %6, %22 : vector<8x32xf32>
    %cst_14 = arith.constant 9.99999974E-6 : f32
    %24 = vector.broadcast %cst_14 : f32 to vector<8x1xf32>
    %25 = arith.addf %21, %24 : vector<8x1xf32>
    %26 = math.rsqrt %25 : vector<8x1xf32>
    %27 = vector.broadcast %26 : vector<8x1xf32> to vector<8x32xf32>
    %28 = arith.mulf %23, %27 : vector<8x32xf32>
    %29 = vector.broadcast %7 : vector<1x32xf32> to vector<8x32xf32>
    %30 = arith.mulf %28, %29 : vector<8x32xf32>
    %31 = vector.broadcast %8 : vector<1x32xf32> to vector<8x32xf32>
    %32 = arith.addf %30, %31 : vector<8x32xf32>
    %cst_15 = arith.constant 0.000000e+00 : f32
    %33 = vector.broadcast %cst_15 : f32 to vector<8x32xf32>
    %34 = arith.maximumf %32, %33 : vector<8x32xf32>
    %c0_16 = arith.constant 0 : index
    %c0_17 = arith.constant 0 : index
    %35 = vector.load %arg4[%c0_16, %c0_17] : memref<32x32xf32, #tpu.memory_space<vmem>>, vector<32x32xf32>
    %cst_18 = arith.constant dense<0.000000e+00> : vector<8x32xf32>
    %36 = tpu.matmul %34, %35, %cst_18 {dimension_numbers = #tpu.dot_dimension_numbers<[1], [0], [0], [1], [0, 0, 1, 1], [], []>} : vector<8x32xf32>, vector<32x32xf32>, vector<8x32xf32> -> vector<8x32xf32>
    %c0_19 = arith.constant 0 : index
    %c0_20 = arith.constant 0 : index
    %37 = vector.load %arg7[%c0_19, %c0_20] : memref<5x32xf32, #tpu.memory_space<vmem>>, vector<1x32xf32>
    %38 = vector.broadcast %37 : vector<1x32xf32> to vector<8x32xf32>
    %39 = arith.addf %36, %38 : vector<8x32xf32>
    %c0_21 = arith.constant 0 : index
    %c0_22 = arith.constant 0 : index
    %40 = vector.load %arg5[%c0_21, %c0_22] : memref<4x32xf32, #tpu.memory_space<vmem>>, vector<4x32xf32>
    %cst_23 = arith.constant dense<0.000000e+00> : vector<8x32xf32>
    %41 = tpu.matmul %1, %40, %cst_23 {dimension_numbers = #tpu.dot_dimension_numbers<[1], [0], [0], [1], [0, 0, 1, 1], [], []>} : vector<8x4xf32>, vector<4x32xf32>, vector<8x32xf32> -> vector<8x32xf32>
    %c1_24 = arith.constant 1 : index
    %c0_25 = arith.constant 0 : index
    %42 = vector.load %arg7[%c1_24, %c0_25] : memref<5x32xf32, #tpu.memory_space<vmem>>, vector<1x32xf32>
    %43 = vector.broadcast %42 : vector<1x32xf32> to vector<8x32xf32>
    %44 = arith.addf %41, %43 : vector<8x32xf32>
    %c2_26 = arith.constant 2 : index
    %c0_27 = arith.constant 0 : index
    %45 = vector.load %arg7[%c2_26, %c0_27] : memref<5x32xf32, #tpu.memory_space<vmem>>, vector<1x32xf32>
    %c3 = arith.constant 3 : index
    %c0_28 = arith.constant 0 : index
    %46 = vector.load %arg7[%c3, %c0_28] : memref<5x32xf32, #tpu.memory_space<vmem>>, vector<1x32xf32>
    %cst_29 = arith.constant dense<0.000000e+00> : vector<8xf32>
    %47 = vector.multi_reduction <add>, %39, %cst_29 [1] : vector<8x32xf32> to vector<8xf32>
    %48 = vector.shape_cast %47 : vector<8xf32> to vector<8x1xf32>
    %cst_30 = arith.constant 3.200000e+01 : f32
    %49 = vector.broadcast %cst_30 : f32 to vector<8x1xf32>
    %50 = arith.divf %48, %49 : vector<8x1xf32>
    %51 = arith.mulf %39, %39 : vector<8x32xf32>
    %cst_31 = arith.constant dense<0.000000e+00> : vector<8xf32>
    %52 = vector.multi_reduction <add>, %51, %cst_31 [1] : vector<8x32xf32> to vector<8xf32>
    %53 = vector.shape_cast %52 : vector<8xf32> to vector<8x1xf32>
    %cst_32 = arith.constant 3.200000e+01 : f32
    %54 = vector.broadcast %cst_32 : f32 to vector<8x1xf32>
    %55 = arith.divf %53, %54 : vector<8x1xf32>
    %56 = arith.mulf %50, %50 : vector<8x1xf32>
    %57 = arith.subf %55, %56 : vector<8x1xf32>
    %cst_33 = arith.constant 0.000000e+00 : f32
    %58 = vector.broadcast %cst_33 : f32 to vector<8x1xf32>
    %59 = arith.maximumf %57, %58 : vector<8x1xf32>
    %60 = vector.broadcast %50 : vector<8x1xf32> to vector<8x32xf32>
    %61 = arith.subf %39, %60 : vector<8x32xf32>
    %cst_34 = arith.constant 9.99999974E-6 : f32
    %62 = vector.broadcast %cst_34 : f32 to vector<8x1xf32>
    %63 = arith.addf %59, %62 : vector<8x1xf32>
    %64 = math.rsqrt %63 : vector<8x1xf32>
    %65 = vector.broadcast %64 : vector<8x1xf32> to vector<8x32xf32>
    %66 = arith.mulf %61, %65 : vector<8x32xf32>
    %67 = vector.broadcast %45 : vector<1x32xf32> to vector<8x32xf32>
    %68 = arith.mulf %66, %67 : vector<8x32xf32>
    %69 = vector.broadcast %46 : vector<1x32xf32> to vector<8x32xf32>
    %70 = arith.addf %68, %69 : vector<8x32xf32>
    %71 = arith.addf %70, %44 : vector<8x32xf32>
    %cst_35 = arith.constant 0.000000e+00 : f32
    %72 = vector.broadcast %cst_35 : f32 to vector<8x32xf32>
    %73 = arith.maximumf %71, %72 : vector<8x32xf32>
    %c4 = arith.constant 4 : index
    %c0_36 = arith.constant 0 : index
    %74 = vector.load %arg7[%c4, %c0_36] : memref<5x32xf32, #tpu.memory_space<vmem>>, vector<1x32xf32>
    %75 = vector.broadcast %74 : vector<1x32xf32> to vector<8x32xf32>
    %76 = arith.mulf %73, %75 : vector<8x32xf32>
    %cst_37 = arith.constant dense<0.000000e+00> : vector<8xf32>
    %77 = vector.multi_reduction <add>, %76, %cst_37 [1] : vector<8x32xf32> to vector<8xf32>
    %78 = vector.shape_cast %77 : vector<8xf32> to vector<8x1xf32>
    %c0_38 = arith.constant 0 : index
    %c0_39 = arith.constant 0 : index
    %79 = vector.load %arg8[%c0_38, %c0_39] : memref<8x1xf32, #tpu.memory_space<vmem>>, vector<8x1xf32>
    tpu.vector_store %arg8[%c0_38, %c0_39], %78 {strides = array<i32>} : memref<8x1xf32, #tpu.memory_space<vmem>>, vector<8x1xf32>,
    return
  }
  func.func @transform_0(%arg0: i32) -> (i32, i32) {
    %c0_i32 = arith.constant 0 : i32
    %c0_i32_0 = arith.constant 0 : i32
    return %arg0, %c0_i32 : i32, i32
  }
  func.func @transform_1(%arg0: i32) -> (i32, i32) {
    %c0_i32 = arith.constant 0 : i32
    %c0_i32_0 = arith.constant 0 : i32
    return %arg0, %c0_i32 : i32, i32
  }
  func.func @transform_2(%arg0: i32) -> (i32, i32) {
    %c0_i32 = arith.constant 0 : i32
    %c0_i32_0 = arith.constant 0 : i32
    %c0_i32_1 = arith.constant 0 : i32
    return %c0_i32, %c0_i32_0 : i32, i32
  }
  func.func @transform_3(%arg0: i32) -> (i32, i32) {
    %c0_i32 = arith.constant 0 : i32
    %c0_i32_0 = arith.constant 0 : i32
    %c0_i32_1 = arith.constant 0 : i32
    return %c0_i32, %c0_i32_0 : i32, i32
  }
  func.func @transform_4(%arg0: i32) -> (i32, i32) {
    %c0_i32 = arith.constant 0 : i32
    %c0_i32_0 = arith.constant 0 : i32
    %c0_i32_1 = arith.constant 0 : i32
    return %c0_i32, %c0_i32_0 : i32, i32
  }
  func.func @transform_5(%arg0: i32) -> (i32, i32) {
    %c0_i32 = arith.constant 0 : i32
    %c0_i32_0 = arith.constant 0 : i32
    %c0_i32_1 = arith.constant 0 : i32
    return %c0_i32, %c0_i32_0 : i32, i32
  }
  func.func @transform_6(%arg0: i32) -> (i32, i32) {
    %c0_i32 = arith.constant 0 : i32
    %c0_i32_0 = arith.constant 0 : i32
    %c0_i32_1 = arith.constant 0 : i32
    return %c0_i32, %c0_i32_0 : i32, i32
  }
  func.func @transform_7(%arg0: i32) -> (i32, i32) {
    %c0_i32 = arith.constant 0 : i32
    %c0_i32_0 = arith.constant 0 : i32
    return %arg0, %c0_i32 : i32, i32
  }
}

</mosaic_0001>

<bundles_post_ra>
// kernel: _critic_forward.1
= control target key start
LH: loop header
LB: loop body
LE: loop exit
PB: predicated region body
PF: predicated region fallthrough
CT: control target
= control target key end

     0   :  { %12 = vsyncpa [#allocation3], 0  ;;  %s621_s0 = inlined_call_operand.hbm [shape: f32[8,16], index: 0, kind: input, shape index: {}]   ;;  %s622_s1 = inlined_call_operand.vmem [shape: f32[8,4], index: 1, kind: input, shape index: {}]   ;;  %s623_s2 = inlined_call_operand.hbm [shape: f32[16,32], index: 2, kind: input, shape index: {}]   ;;  %s624_s3 = inlined_call_operand.vmem [shape: f32[32,32], index: 3, kind: input, shape index: {}]   ;;  %s625_s4 = inlined_call_operand.vmem [shape: f32[4,32], index: 4, kind: input, shape index: {}]   ;;  %s626_s5 = inlined_call_operand.vmem [shape: f32[3,32], index: 5, kind: input, shape index: {}]   ;;  %s627_s6 = inlined_call_operand.vmem [shape: f32[5,32], index: 6, kind: input, shape index: {}]   ;;  %s628_s7 = inlined_call_operand.vmem [shape: f32[8,1], index: 7, kind: output, shape index: {}]  }
   0x1   :  { %13 = vsyncpa [#allocation5], 0  ;;  %s492_s24 = smov [#allocation2]   ;;  %s493_s26 = smov [#allocation4]  }
   0x2   :  { %s20_s25 = sshll.u32 %s492_s24, 4  ;;  %s31_s27 = sshll.u32 %s493_s26, 4  ;;  %s21_s25 = int_to_ptr.vmem [resolvable:$true] %s20_s25  ;;  %s539_s27 = int_to_ptr.vmem [resolvable:$true] %s31_s27 }
   0x3   :  { %s444_s30 = scalar_lea.hbm %s621_s0, 128 }
   0x4   :  { %p445_p0 = scmp.ne.s32.totalorder %s621_s0, %s444_s30  ;;  %p448_p1 = scmp.lt.u32.totalorder %s444_s30, %s621_s0 }
   0x6   :  { %p450_p2 = pnand %p448_p1, %p445_p0 }
   0x8   :  { %453 = shalt.err (!%p450_p2)
}
   0x9   :  { %s454_s12 = scalar_lea.vmem %s21_s25, 128  ;;  %p459_p4 = scmp.lt.s32.totalorder %s21_s25, %s21_s25 }
   0xa   :  { %p455_p3 = scmp.ne.s32.totalorder %s21_s25, %s454_s12  ;;  %p460_p5 = scmp.lt.s32.totalorder %s454_s12, %s454_s12 }
   0xc   :  { %p461_p6 = por %p460_p5, %p459_p4 }
   0xe   :  { %p462_p7 = pnand %p461_p6, %p455_p3 }
  0x10   :  { %465 = shalt.err (!%p462_p7)
}
  0x11   :  { %23 = dma.hbm_to_vmem [thread:$0]  %s621_s0, 128, %s21_s25, [#allocation3]  }
  0x12   :  { %s466_s17 = scalar_lea.hbm %s623_s2, 256 }
  0x13   :  { %p467_p8 = scmp.ne.s32.totalorder %s623_s2, %s466_s17  ;;  %p470_p9 = scmp.lt.u32.totalorder %s466_s17, %s623_s2 }
  0x15   :  { %p472_p10 = pnand %p470_p9, %p467_p8 }
  0x17   :  { %475 = shalt.err (!%p472_p10)
}
  0x18   :  { %s476_s22 = scalar_lea.vmem %s539_s27, 256  ;;  %p481_p12 = scmp.lt.s32.totalorder %s539_s27, %s539_s27 }
  0x19   :  { %p477_p11 = scmp.ne.s32.totalorder %s539_s27, %s476_s22  ;;  %p482_p13 = scmp.lt.s32.totalorder %s476_s22, %s476_s22 }
  0x1b   :  { %p483_p0 = por %p482_p13, %p481_p12 }
  0x1d   :  { %p484_p1 = pnand %p483_p0, %p477_p11 }
  0x1f   :  { %487 = shalt.err (!%p484_p1)
}
  0x20   :  { %s494_s0 = smov 128   ;;  %s495_s23 = smov 8  }
  0x21   :  { %37 = dma.hbm_to_vmem [thread:$0]  %s623_s2, 256, %s539_s27, [#allocation5], %s494_s0, %s494_s0, %s495_s23  }
  0x22   :  { %488 = dma.done.wait [#allocation3], 128  }
  0x23   :  { %489 = vsyncadd [#allocation3], 4294967168 }
  0x24   :  { %490 = dma.done.wait [#allocation5], 256  }
  0x25   :  { %491 = vsyncadd [#allocation5], 4294967040  ;;  %v496_v0 = vmov 0.0|0.0   ;;  %vm497_vm0 = vmmov 0   ;;  %v498_v1 = vmov 0.0   ;;  %v54_v2 = vld [vmem:[#allocation4] sm:$0xff] }
  0x26   :  { %424 = vmatprep.subr.bf16.mxu0 %v496_v0  ;;  %405 = vmatprep.mubr.msk.f32.mxu0 %vm497_vm0, %v498_v1  ;;  %v55_v3 = vld [vmem:[#allocation4 + $0x8] sm:$0xff]  ;;  %v52_v5 = vld [vmem:[#allocation2] sm:$0xff]  ;;  %vm61_vm1 = vcmask 130048   ;;  %vm137_vm2 = vcmask 261120   ;;  %v167_v14 = vld [vmem:[%s624_s3 + $0x8] sm:$0xff]  ;;  %vm258_vm3 = vcmask 1043456  }
  0x27   :  { %427 = vmatprep.subr.bf16.mxu1 %v496_v0  ;;  %416 = vmatprep.mubr.msk.f32.mxu1 %vm497_vm0, %v498_v1  ;;  %v425_v4 = vpack.c.bf16 %v55_v3, %v54_v2  ;;  %v379_v6 = vld [vmem:[%s626_s5] ss:$0 sm:$0xff]  ;;  %v168_v15 = vld [vmem:[%s624_s3 + $0x10] sm:$0xff]  ;;  %v169_v17 = vld [vmem:[%s624_s3 + $0x18] sm:$0xff]  ;;  %vm254_vm4 = vcmask 31744   ;;  %vm371_vm5 = vcmask 7168  }
  0x28   :  { %v166_v13 = vld [vmem:[%s624_s3] sm:$0xff]  ;;  %v431_v18 = vpack.c.bf16 %v169_v17, %v168_v15 }
  0x29   :  { %426 = vmatpush3.bf16.msra.mxu0 %v425_v4  ;;  %v428_v16 = vpack.c.bf16 %v167_v14, %v166_v13  ;;  %v248_v19 = vld [vmem:[%s625_s4] sm:$0xf] }
  0x2a   :  { %419 = vmatprep.subr.mxu0 %v498_v1  ;;  %v53_v20 = vld [vmem:[%s622_s1] sm:$0xff] }
  0x2b   :  { %429 = vmatpush3.bf16.msra.mxu1 %v428_v16  ;;  %v381_v31 = vld [vmem:[%s626_s5 + $0x1] ss:$0 sm:$0xff]  ;;  %v382_v33 = vld [vmem:[%s626_s5 + $0x2] ss:$0 sm:$0xff]  ;;  %v383_v37 = vld [vmem:[%s627_s6] ss:$0 sm:$0xff] }
  0x2c   :  { %406 = vmatmul.mubr.msk.f32.vlgmr.msra.gmra.mrb[0].mxu0 %vm61_vm1, %v52_v5  ;;  %430 = vmatprep.subr.bf16.mxu1 %v496_v0  ;;  %v385_v56 = vld [vmem:[%s627_s6 + $0x1] ss:$0 sm:$0xff]  ;;  %v388_v57 = vld [vmem:[%s627_s6 + $0x2] ss:$0 sm:$0xff]  ;;  %v389_v59 = vld [vmem:[%s627_s6 + $0x3] ss:$0 sm:$0xff] }
  0x2d   :  { %421 = vmatprep.mubr.msk.f32.mxu0 %vm497_vm0, %v498_v1  ;;  %420 = vmatpush3.msk.msra.mxu0 %vm258_vm3, %v248_v19  ;;  %v390_v0 = vld [vmem:[%s627_s6 + $0x4] ss:$0 sm:$0xff] }
  0x2f   :  { %432 = vmatpush3.bf16.msra.mxu1 %v431_v18 }
  0x30   :  { %422 = vmatmul.mubr.msk.f32.vlgmr.msra.gmra.mrb[2].mxu0 %vm254_vm4, %v53_v20 }
  0xff   :  { %v131_v7 = vpop.f32.mrb[0].mxu0 }
 0x100   :  { %v132_v8 = vadd.f32 %v379_v6, %v131_v7  ;;  %v407_v9 = vpop.f32.mrb[1].mxu0 }
 0x102   :  { %v138_v10 = vsel %vm137_vm2, %v132_v8, 0.0  ;;  %v143_v11 = vmul.f32 %v132_v8, %v132_v8 }
 0x103   :  { %139 = vadd.xlane.f32.xlu0 %v138_v10  ;;  %v328_v44 = vpop.f32.mrb[2].mxu0 }
 0x104   :  { %v144_v12 = vsel %vm137_vm2, %v143_v11, 0.0  ;;  %v423_v45 = vpop.f32.mrb[3].mxu0  ;;  %v329_v60 = vadd.f32 %v385_v56, %v328_v44 }
 0x107   :  { %145 = vadd.xlane.f32.xlu0 %v144_v12 }
 0x190   :  { %v140_v21 = vpop.xlane.xlu0 %139 }
 0x191   :  { %v142_v22 = vmul.f32 0.03125, %v140_v21 }
 0x193   :  { %v148_v24 = vmul.f32 %v142_v22, %v142_v22  ;;  %v151_v29 = vsub.f32 %v132_v8, %v142_v22 }
 0x194   :  { %v146_v23 = vpop.xlane.xlu0 %145 }
 0x195   :  { %v147_v25 = vmul.f32 0.03125, %v146_v23 }
 0x197   :  { %v149_v26 = vsub.f32 %v147_v25, %v148_v24 }
 0x199   :  { %v150_v27 = vmax.f32 %v149_v26, 0.0 }
 0x19b   :  { %v152_v28 = vadd.f32 1e-05, %v150_v27 }
 0x19d   :  { %440 = vrsqrt.f32 %v152_v28 }
 0x1a7   :  { %v441_v30 = vpop.eup %440 }
 0x1a8   :  { %v154_v32 = vmul.f32 %v441_v30, %v151_v29 }
 0x1aa   :  { %v159_v34 = vmul.f32 %v381_v31, %v154_v32 }
 0x1ac   :  { %v164_v35 = vadd.f32 %v382_v33, %v159_v34 }
 0x1ae   :  { %v165_v36 = vmax.f32 %v164_v35, 0.0 }
 0x1b0   :  { %417 = vmatmul.mubr.msk.f32.vlgmr.msra.gmra.mrb[0].mxu1 %vm137_vm2, %v165_v36 }
 0x283   :  { %v244_v38 = vpop.f32.mrb[0].mxu1 }
 0x284   :  { %v245_v39 = vadd.f32 %v383_v37, %v244_v38  ;;  %v418_v40 = vpop.f32.mrb[1].mxu1 }
 0x286   :  { %v334_v41 = vsel %vm137_vm2, %v245_v39, 0.0  ;;  %v338_v42 = vmul.f32 %v245_v39, %v245_v39 }
 0x287   :  { %335 = vadd.xlane.f32.xlu1 %v334_v41 }
 0x288   :  { %v339_v43 = vsel %vm137_vm2, %v338_v42, 0.0 }
 0x28b   :  { %340 = vadd.xlane.f32.xlu1 %v339_v43 }
 0x314   :  { %v336_v46 = vpop.xlane.xlu1 %335 }
 0x315   :  { %v337_v47 = vmul.f32 0.03125, %v336_v46 }
 0x317   :  { %v343_v49 = vmul.f32 %v337_v47, %v337_v47  ;;  %v346_v54 = vsub.f32 %v245_v39, %v337_v47 }
 0x318   :  { %v341_v48 = vpop.xlane.xlu1 %340 }
 0x319   :  { %v342_v50 = vmul.f32 0.03125, %v341_v48 }
 0x31b   :  { %v344_v51 = vsub.f32 %v342_v50, %v343_v49 }
 0x31d   :  { %v345_v52 = vmax.f32 %v344_v51, 0.0 }
 0x31f   :  { %v347_v53 = vadd.f32 1e-05, %v345_v52 }
 0x321   :  { %442 = vrsqrt.f32 %v347_v53 }
 0x32b   :  { %v443_v55 = vpop.eup %442 }
 0x32c   :  { %v349_v58 = vmul.f32 %v443_v55, %v346_v54 }
 0x32e   :  { %v354_v61 = vmul.f32 %v388_v57, %v349_v58 }
 0x330   :  { %v359_v62 = vadd.f32 %v389_v59, %v354_v61 }
 0x332   :  { %v360_v63 = vadd.f32 %v359_v62, %v329_v60 }
 0x334   :  { %v361_v1 = vmax.f32 %v360_v63, 0.0 }
 0x336   :  { %v367_v2 = vmul.f32 %v390_v0, %v361_v1 }
 0x338   :  { %v368_v3 = vsel %vm137_vm2, %v367_v2, 0.0 }
 0x339   :  { %369 = vadd.xlane.f32.xlu0 %v368_v3 }
 0x3c6   :  { %v370_v4 = vpop.xlane.xlu0 %369 }
 0x3c7   :  { %372 = vst.msk [vmem:[%s628_s7] sm:$0xff] %vm371_vm5, %v370_v4 }
 0x3c8   :  { %377 = vsyncpa [#allocation3], 1 }
 0x3c9   :  { %378 = vsyncpa [#allocation5], 1 }

</bundles_post_ra>
